<compile_context>
chip_gen: v5e
topology: v5e:2x2
jax: 0.10.0
libtpu: 0.0.40
codegen_flags: <defaults>
</compile_context>

<pallas_src>
import jax
import jax.numpy as jnp
from jax.experimental import pallas as pl
from jax.experimental.pallas import tpu as pltpu


_LANE = 128
_SUBLANE = 8

# Double-buffered working-set budget per TensorCore.  Chosen to stay well
# inside v7x's 64 MiB physical VMEM/TC (and trivially inside v5e/v6e's 128 MiB).
_VMEM_WORKING_SET_BUDGET = 24 << 20
# Scoped-VMEM limit requested from Mosaic (v5e default is only 16 MiB).
_VMEM_LIMIT_BYTES = 48 << 20


def _round_up(x, m):
    return ((x + m - 1) // m) * m


def _transdeconv_kernel(wt_ref, x_ref, sg_ref, ss_ref, y_ref):
    # wt_ref : [ts, C]   spot tile of weight = square(trans).T  (matmul LHS)
    # x_ref  : [C, tg]   gene tile of X
    # sg_ref : [1, tg]   scaler_g gene tile
    # ss_ref : [ts, 1]   scaler_s spot tile
    # y_ref  : [ts, tg]  output Y_hat tile
    preds_t = jnp.dot(wt_ref[...], x_ref[...],
                      preferred_element_type=jnp.float32)      # [ts, tg] (MXU)
    # Row/column exponential scaling broadcast over the tile (EUP + VPU slots,
    # effectively free in this HBM-bound kernel).
    y = jnp.exp(sg_ref[...]) * preds_t * jnp.exp(ss_ref[...])
    y_ref[...] = y.astype(y_ref.dtype)


def transdeconv_forward(X, W, scaler_g, scaler_s, *, ts=512, tg=4096,
                        out_dtype=jnp.float32):
    """Pallas implementation of TransDeconv.forward.

    Args:
      X:        [Cell, Gene]  reference gene signature
      W:        [Cell, Spot]  LinTranslator.trans parameter
      scaler_g: [1, Gene]
      scaler_s: [Spot, 1]
      out_dtype: dtype of Y_hat (keep f32 for exact parity with PyTorch;
                 bf16 roughly halves HBM writeback if downstream tolerates it).
    Returns:
      (Y_hat [Spot, Gene], weight [Spot, Cell])
    """
    C, G = X.shape
    _, S = W.shape

    # weight = square(trans).T -- tiny one-shot XLA op; also the matmul LHS.
    weight = jnp.square(W).T                                   # [Spot, Cell]

    # --- tile selection -----------------------------------------------------
    # Clamp to the problem; keep lane/sublane alignment for partial tiles.
    ts = S if ts >= S else max(_SUBLANE, (ts // _SUBLANE) * _SUBLANE)
    tg = G if tg >= G else max(_LANE, (tg // _LANE) * _LANE)

    # Megacore: guarantee >= 2 grid steps on a parallel axis so both v7x
    # TensorCores get work (no effect on single-TC v5e/v6e).
    if pl.cdiv(G, tg) * pl.cdiv(S, ts) < 2:
        if G >= 2 * _LANE:
            tg = _round_up(pl.cdiv(G, 2), _LANE)
        elif S >= 2 * _SUBLANE:
            ts = _round_up(pl.cdiv(S, 2), _SUBLANE)

    # Keep the double-buffered working set inside the per-core VMEM budget.
    def _working_set(ts_, tg_):
        out_b = 2 * ts_ * tg_ * jnp.dtype(out_dtype).itemsize
        w_b = 2 * ts_ * C * 4
        x_b = 2 * C * tg_ * 4
        sc_b = 2 * (tg_ + ts_) * 4
        return out_b + w_b + x_b + sc_b

    while _working_set(ts, tg) > _VMEM_WORKING_SET_BUDGET:
        if tg > 2 * _LANE and tg >= ts:
            tg = _round_up(tg // 2, _LANE)
        elif ts > 2 * _SUBLANE:
            ts = _round_up(ts // 2, _SUBLANE)
        else:
            break

    # Gene axis OUTER, spot axis INNER: the X block index is constant across
    # the inner spot loop, so Pallas keeps the X gene tile resident and X is
    # read from HBM only once; only the small weight tile is re-fetched.
    grid = (pl.cdiv(G, tg), pl.cdiv(S, ts))

    y_hat = pl.pallas_call(
        _transdeconv_kernel,
        grid=grid,
        in_specs=[
            pl.BlockSpec((ts, C), lambda j, s: (s, 0)),    # weight spot tile
            pl.BlockSpec((C, tg), lambda j, s: (0, j)),    # X gene tile
            pl.BlockSpec((1, tg), lambda j, s: (0, j)),    # scaler_g gene tile
            pl.BlockSpec((ts, 1), lambda j, s: (s, 0)),    # scaler_s spot tile
        ],
        out_specs=pl.BlockSpec((ts, tg), lambda j, s: (s, j)),   # Y_hat tile
        out_shape=jax.ShapeDtypeStruct((S, G), out_dtype),
        compiler_params=pltpu.CompilerParams(
            dimension_semantics=("parallel", "parallel"),
            vmem_limit_bytes=_VMEM_LIMIT_BYTES),
    )(weight, X, scaler_g, scaler_s)

    return y_hat, weight


if __name__ == "__main__":
    # Small shapes consistent with the module: Cell=8, Spot=64, Gene=1024.
    # (Gene=1024 exercises the megacore force-split: grid becomes (2, 1).)
    C, S, G = 8, 64, 1024

    key = jax.random.PRNGKey(0)
    k1, k2, k3, k4 = jax.random.split(key, 4)
    X = jax.random.normal(k1, (C, G), dtype=jnp.float32)       # [Cell, Gene]
    W = jax.random.normal(k2, (C, S), dtype=jnp.float32)       # trans param
    # Module __init__ zero-inits the scalers; use small randoms so the exp()
    # scaling path is actually exercised.
    scaler_g = 0.1 * jax.random.normal(k3, (1, G), dtype=jnp.float32)
    scaler_s = 0.1 * jax.random.normal(k4, (S, 1), dtype=jnp.float32)

    y_hat, weight = transdeconv_forward(X, W, scaler_g, scaler_s)
    jax.block_until_ready((y_hat, weight))

    # Plain-JAX reference of the PyTorch forward.
    wsq_ref = W * W
    ref_y = jnp.exp(scaler_g) * (X.T @ wsq_ref).T * jnp.exp(scaler_s)
    ref_w = wsq_ref.T

    assert y_hat.shape == (S, G) and weight.shape == (S, C)
    assert jnp.allclose(y_hat, ref_y, rtol=1e-4, atol=1e-4), "Y_hat mismatch"
    assert jnp.allclose(weight, ref_w, rtol=1e-5, atol=1e-5), "weight mismatch"

    print("KERNEL_OK")
</pallas_src>

<mosaic_0001>
module attributes {stable_mosaic.version = 11 : i64} {
  func.func @_transdeconv_kernel(%arg0: i32, %arg1: i32, %arg2: memref<64x8xf32, #tpu.memory_space<vmem>>, %arg3: memref<8x512xf32, #tpu.memory_space<vmem>>, %arg4: memref<1x512xf32, #tpu.memory_space<vmem>>, %arg5: memref<64x1xf32, #tpu.memory_space<vmem>>, %arg6: memref<64x512xf32, #tpu.memory_space<vmem>>) attributes {dimension_semantics = [#tpu.dimension_semantics<parallel>, #tpu.dimension_semantics<parallel>], iteration_bounds = array<i64: 2, 1>, scalar_prefetch = 0 : i64, scratch_operands = 0 : i64, tpu.core_type = #tpu.core_type<tc>, window_params = [{transform_indices = @transform_0, window_bounds = array<i64: 64, 8>}, {transform_indices = @transform_1, window_bounds = array<i64: 8, 512>}, {transform_indices = @transform_2, window_bounds = array<i64: 1, 512>}, {transform_indices = @transform_3, window_bounds = array<i64: 64, 1>}, {transform_indices = @transform_4, window_bounds = array<i64: 64, 512>}]} {
    %c0 = arith.constant 0 : index
    %c0_0 = arith.constant 0 : index
    %0 = vector.load %arg2[%c0, %c0_0] : memref<64x8xf32, #tpu.memory_space<vmem>>, vector<64x8xf32>
    %c0_1 = arith.constant 0 : index
    %c0_2 = arith.constant 0 : index
    %1 = vector.load %arg3[%c0_1, %c0_2] : memref<8x512xf32, #tpu.memory_space<vmem>>, vector<8x512xf32>
    %cst = arith.constant dense<0.000000e+00> : vector<64x512xf32>
    %2 = tpu.matmul %0, %1, %cst {dimension_numbers = #tpu.dot_dimension_numbers<[1], [0], [0], [1], [0, 0, 1, 1], [], []>} : vector<64x8xf32>, vector<8x512xf32>, vector<64x512xf32> -> vector<64x512xf32>
    %c0_3 = arith.constant 0 : index
    %c0_4 = arith.constant 0 : index
    %3 = vector.load %arg4[%c0_3, %c0_4] : memref<1x512xf32, #tpu.memory_space<vmem>>, vector<1x512xf32>
    %4 = math.exp %3 : vector<1x512xf32>
    %5 = vector.broadcast %4 : vector<1x512xf32> to vector<64x512xf32>
    %6 = arith.mulf %5, %2 : vector<64x512xf32>
    %c0_5 = arith.constant 0 : index
    %c0_6 = arith.constant 0 : index
    %7 = vector.load %arg5[%c0_5, %c0_6] : memref<64x1xf32, #tpu.memory_space<vmem>>, vector<64x1xf32>
    %8 = math.exp %7 : vector<64x1xf32>
    %9 = vector.broadcast %8 : vector<64x1xf32> to vector<64x512xf32>
    %10 = arith.mulf %6, %9 : vector<64x512xf32>
    %c0_7 = arith.constant 0 : index
    %c0_8 = arith.constant 0 : index
    %11 = vector.load %arg6[%c0_7, %c0_8] : memref<64x512xf32, #tpu.memory_space<vmem>>, vector<64x512xf32>
    tpu.vector_store %arg6[%c0_7, %c0_8], %10 {strides = array<i32>} : memref<64x512xf32, #tpu.memory_space<vmem>>, vector<64x512xf32>,
    return
  }
  func.func @transform_0(%arg0: i32, %arg1: i32) -> (i32, i32) {
    %c0_i32 = arith.constant 0 : i32
    %c0_i32_0 = arith.constant 0 : i32
    return %arg1, %c0_i32 : i32, i32
  }
  func.func @transform_1(%arg0: i32, %arg1: i32) -> (i32, i32) {
    %c0_i32 = arith.constant 0 : i32
    %c0_i32_0 = arith.constant 0 : i32
    return %c0_i32, %arg0 : i32, i32
  }
  func.func @transform_2(%arg0: i32, %arg1: i32) -> (i32, i32) {
    %c0_i32 = arith.constant 0 : i32
    %c0_i32_0 = arith.constant 0 : i32
    return %c0_i32, %arg0 : i32, i32
  }
  func.func @transform_3(%arg0: i32, %arg1: i32) -> (i32, i32) {
    %c0_i32 = arith.constant 0 : i32
    %c0_i32_0 = arith.constant 0 : i32
    return %arg1, %c0_i32 : i32, i32
  }
  func.func @transform_4(%arg0: i32, %arg1: i32) -> (i32, i32) {
    %c0_i32 = arith.constant 0 : i32
    return %arg1, %arg0 : i32, i32
  }
}

</mosaic_0001>

<bundles_post_ra>
// kernel: tpu_custom_call.1
= control target key start
LH: loop header
LB: loop body
LE: loop exit
PB: predicated region body
PF: predicated region fallthrough
CT: control target
= control target key end

     0   :  { %9 = vsyncpa [#allocation3], 0  ;;  %s1281_s0 = inlined_call_operand.vmem [shape: f32[64,8], index: 0, kind: input, shape index: {}]   ;;  %s1282_s1 = inlined_call_operand.vmem [shape: f32[8,1024], index: 1, kind: input, shape index: {}]   ;;  %s1283_s2 = inlined_call_operand.vmem [shape: f32[1,1024], index: 2, kind: input, shape index: {}]   ;;  %s1284_s3 = inlined_call_operand.vmem [shape: f32[64,1], index: 3, kind: input, shape index: {}]   ;;  %s1285_s4 = inlined_call_operand.hbm [shape: f32[64,1024], index: 4, kind: output, shape index: {}]  }
   0x1   :  { %11 = vsyncpa [#allocation3 + $0x1], 0  ;;  %s1019_s15 = smov 0   ;;  %s1021_s16 = smov 0  }
   0x2   :  { %s1023_s17 = smov 0   ;;  %s1025_s18 = smov 0  }
   0x3   :  { %s1027_s19 = smov 0   ;;  %s1029_s20 = smov 0  }
   0x4 LB: > { %s781_s21 = sadd.s32 4294967295, %s988_s20   ;;  %s782_s22 = sadd.s32 4294967294, %s988_s20   ;;  %s988_s20 = sphi %s1029_s20, %s17_s20   ;;  %s984_s19 = sphi %s1027_s19, %s1292_s19   ;;  %s980_s18 = sphi %s1025_s18, %s1291_s18   ;;  %s976_s17 = sphi %s1023_s17, %s1290_s17   ;;  %s972_s16 = sphi %s1021_s16, %s1289_s16   ;;  %s968_s15 = sphi %s1019_s15, %s1288_s15  }
   0x5   : > { %s29_s23 = sadd.s32 1, %s984_s19  ;;  %s142_s24 = sadd.s32 1, %s976_s17 }
   0x6   : > { %p31_p0 = scmp.ge.s32.totalorder %s29_s23, 2  ;;  %p152_p1 = scmp.ne.s32.totalorder %s976_s17, %s972_s16 }
   0x7   : > { %p153_p2 = scmp.eq.s32.totalorder %s781_s21, 1  ;;  %p158_p3 = scmp.ne.s32.totalorder %s972_s16, %s968_s15 }
   0x8   : > { %s1294_s23 = smov (%p31_p0, %s29_s23), 0  ;;  %p159_p5 = scmp.eq.s32.totalorder %s782_s22, 1 }
   0x9   : > { %p1059_p4 = por %p153_p2, %p152_p1  ;;  %s138_s26 = ssub.s32 %s984_s19, %s1294_s23 }
   0xa   : > { %p787_p6 = scmp.ge.s32.totalorder %s988_s20, 1  ;;  %p140_p7 = scmp.eq.s32.totalorder %s138_s26, 0 }
   0xb   : > { %p1066_p8 = por %p159_p5, %p158_p3  ;;  %p212_p9 = scmp.lt.s32.totalorder %s988_s20, 3 }
   0xc   : > { %s1072_s28 = scalar_select %p140_p7, %s976_s17, %s142_s24  }
   0xd   : > { %p213_p10 = pnand %p787_p6, %p212_p9 }
   0xe   : > { %s789_s29 = sshll.u32 (!%p213_p10), %s980_s18, 2  ;;  %s829_s21 = sshll.u32 (!%p213_p10), %s980_s18, 5 }
   0xf   : > { %216 = sbr.rel (%p213_p10) target bundleno = 225 (0xe1), region = 36  ;;  %p259_p11 = scmp.lt.s32.totalorder (!%p213_p10), %s789_s29, 7 }
  0x10   : > { %s665_s26 = scalar_lea.hbm (!%p213_p10), %s1285_s4, %s829_s21 }
  0x11   : > { %s668_s18 = sshll.u32 (!%p213_p10), %s665_s26, 4  ;;  %s669_s18 = int_to_ptr.hbm [resolvable:$true] %s668_s18 }
  0x12   : > { %s924_s6 = sshra.s32 (!%p213_p10), %s669_s18, 4  ;;  %s925_s6 = int_to_ptr.hbm [resolvable:$true] %s924_s6 }
  0x13   : > { %s926_s7 = scalar_lea.hbm (!%p213_p10), %s925_s6, 256  ;;  %p931_p1 = scmp.lt.s32.totalorder (!%p213_p10), %s925_s6, %s1285_s4 }
  0x14   : > { %v990_v0 = vmov 0   ;;  %v522_v1 = vld [vmem:[%s1284_s3] sm:$0xff]  ;;  %s1296_s29 = smov (!%p259_p11, %s789_s29), 7  ;;  %v523_v3 = vld [vmem:[%s1284_s3 + $0x8] sm:$0xff]  ;;  %v524_v4 = vld [vmem:[%s1284_s3 + $0x10] sm:$0xff]  ;;  %vm289_vm0 = vcmask 64512   ;;  %p927_p12 = scmp.ne.s32.totalorder %s925_s6, %s926_s7 }
  0x15   : > { %889 = vset.pattern.permute.xlu0 %v990_v0  ;;  %890 = vset.pattern.permute.xlu1 %v990_v0  ;;  %v530_v2 = vmul.f32 1.442695, %v522_v1  ;;  %s790_s10 = sshll.u32 %s1296_s29, 3  ;;  %v534_v5 = vmul.f32 1.442695, %v524_v4  ;;  %v277_v6 = vld [vmem:[%s1281_s0] sm:$0xff]  ;;  %s267_s12 = scalar_lea.vmem %s1283_s2, %s1296_s29 }
  0x16   : > { %891 = vset.pattern.permute.xlu2 %v990_v0  ;;  %s262_s13 = scalar_lea.vmem %s1282_s1, %s790_s10  ;;  %v532_v10 = vmul.f32 1.442695, %v523_v3  ;;  %v525_v13 = vld [vmem:[%s1284_s3 + $0x18] sm:$0xff]  ;;  %v278_v16 = vld [vmem:[%s1281_s0 + $0x8] sm:$0xff]  ;;  %v279_v19 = vld [vmem:[%s1281_s0 + $0x10] sm:$0xff]  ;;  %p928_p13 = pnand %p927_p12, %p1059_p4 }
  0x17   : > { %892 = vpow2.f32 %v530_v2  ;;  %v285_v7 = vld [vmem:[%s262_s13] sm:$0xff]  ;;  %v286_v8 = vld [vmem:[%s262_s13 + $0x8] sm:$0xff]  ;;  %v287_v9 = vld [vmem:[%s262_s13 + $0x10] sm:$0xff]  ;;  %v536_v15 = vmul.f32 1.442695, %v525_v13  ;;  %s930_s10 = scalar_lea.hbm %s1285_s4, 512 }
  0x18   : > { %894 = vpow2.f32 %v534_v5  ;;  %329 = vmatpush.msra.mxu0 %v285_v7  ;;  %370 = vmatpush.msra.mxu1 %v286_v8  ;;  %v288_v11 = vld [vmem:[%s262_s13 + $0x18] sm:$0xff]  ;;  %v528_v21 = vld [vmem:[%s1284_s3 + $0x30] sm:$0xff]  ;;  %v526_v25 = vld [vmem:[%s1284_s3 + $0x20] sm:$0xff]  ;;  %s249_s13 = sand.u32 1, %s972_s16   ;;  %p929_p0 = pneg %p928_p13 }
  0x19   : > { %411 = vmatpush.msra.mxu2 %v287_v9  ;;  %452 = vmatpush.msra.mxu3 %v288_v11  ;;  %896 = vpow2.f32 %v532_v10  ;;  %v529_v20 = vld [vmem:[%s1284_s3 + $0x38] sm:$0xff]  ;;  %v542_v23 = vmul.f32 1.442695, %v528_v21  ;;  %v538_v26 = vmul.f32 1.442695, %v526_v25  ;;  %v527_v28 = vld [vmem:[%s1284_s3 + $0x28] sm:$0xff]  ;;  %p932_p2 = scmp.lt.s32.totalorder %s930_s10, %s926_s7 }
  0x1a   : > { %792 = vmatmul.msk.f32.vlgmr.msra.gmra.mxu0 %vm289_vm0, %v277_v6  ;;  %800 = vmatmul.msk.f32.vlgmr.msra.gmra.mxu1 %vm289_vm0, %v277_v6  ;;  %898 = vpow2.f32 %v536_v15  ;;  %v544_v22 = vmul.f32 1.442695, %v529_v20  ;;  %v280_v24 = vld [vmem:[%s1281_s0 + $0x18] sm:$0xff]  ;;  %v281_v30 = vld [vmem:[%s1281_s0 + $0x20] sm:$0xff]  ;;  %v540_v31 = vmul.f32 1.442695, %v527_v28 }
  0x1b   : > { %808 = vmatmul.msk.f32.vlgmr.msra.gmra.mxu2 %vm289_vm0, %v277_v6  ;;  %816 = vmatmul.msk.f32.vlgmr.msra.gmra.mxu3 %vm289_vm0, %v277_v6  ;;  %v282_v33 = vld [vmem:[%s1281_s0 + $0x28] sm:$0xff]  ;;  %v283_v35 = vld [vmem:[%s1281_s0 + $0x30] sm:$0xff]  ;;  %v284_v36 = vld [vmem:[%s1281_s0 + $0x38] sm:$0xff]  ;;  %s788_s14 = sshll.u32 %s249_s13, 8  ;;  %s651_s5 = scalar_lea.sflag [#allocation3], %s249_s13 }
  0x1c   : > { %900 = vpow2.f32 %v544_v22  ;;  %v478_v37 = vld [vmem:[%s267_s12] sm:$0xf]  ;;  %s1178_s29 = scalar_lea.vmem [#allocation2], %s788_s14  ;;  %p933_p3 = por %p932_p2, %p931_p1 }
  0x1d   : > { %v893_v12 = vpop.eup %892  ;;  %902 = vpow2.f32 %v542_v23  ;;  %v479_v38 = vmul.f32 1.442695, %v478_v37  ;;  %s666_s30 = sshll.u32 %s1178_s29, 4  ;;  %s667_s30 = int_to_ptr.vmem [resolvable:$true] %s666_s30 }
  0x1e   : > { %548 = vperm.xlu0 %889, %v893_v12   ;;  %v895_v14 = vpop.eup %894  ;;  %904 = vpow2.f32 %v538_v26  ;;  %p934_p5 = pnand %p933_p3, %p929_p0 }
  0x1f   : > { %558 = vperm.xlu1 %890, %v895_v14   ;;  %v897_v17 = vpop.eup %896  ;;  %906 = vpow2.f32 %v540_v31 }
  0x20   : > { %v899_v18 = vpop.eup %898  ;;  %908 = vpow2.f32 %v479_v38 }
  0x22   : > { %793 = vmatmul.msk.f32.gmra.mxu0 %vm289_vm0, %v278_v16  ;;  %801 = vmatmul.msk.f32.gmra.mxu1 %vm289_vm0, %v278_v16  ;;  %v901_v27 = vpop.eup %900 }
  0x23   : > { %809 = vmatmul.msk.f32.gmra.mxu2 %vm289_vm0, %v278_v16  ;;  %817 = vmatmul.msk.f32.gmra.mxu3 %vm289_vm0, %v278_v16  ;;  %v903_v29 = vpop.eup %902 }
  0x24   : > { %v905_v32 = vpop.eup %904 }
  0x25   : > { %568 = vperm.xlu2 %891, %v905_v32   ;;  %v907_v34 = vpop.eup %906 }
  0x26   : > { %553 = vperm.xlu0 %889, %v897_v17   ;;  %v909_v39 = vpop.eup %908 }
  0x27   : > { %563 = vperm.xlu1 %890, %v899_v18   ;;  %v1166_v41 = vperm.slane %v909_v39, 0  ;;  %v1168_v42 = vperm.slane %v909_v39, 1  ;;  %v1174_v49 = vperm.slane %v909_v39, 2  ;;  %v1176_v50 = vperm.slane %v909_v39, 3 }
  0x2a   : > { %794 = vmatmul.msk.f32.gmra.mxu0 %vm289_vm0, %v279_v19  ;;  %802 = vmatmul.msk.f32.gmra.mxu1 %vm289_vm0, %v279_v19 }
  0x2b   : > { %810 = vmatmul.msk.f32.gmra.mxu2 %vm289_vm0, %v279_v19  ;;  %818 = vmatmul.msk.f32.gmra.mxu3 %vm289_vm0, %v279_v19 }
  0x2d   : > { %573 = vperm.xlu2 %891, %v907_v34  }
  0x2e   : > { %578 = vperm.xlu0 %889, %v903_v29  }
  0x2f   : > { %583 = vperm.xlu1 %890, %v901_v27  }
  0x32   : > { %795 = vmatmul.msk.f32.gmra.mxu0 %vm289_vm0, %v280_v24  ;;  %803 = vmatmul.msk.f32.gmra.mxu1 %vm289_vm0, %v280_v24 }
  0x33   : > { %811 = vmatmul.msk.f32.gmra.mxu2 %vm289_vm0, %v280_v24  ;;  %819 = vmatmul.msk.f32.gmra.mxu3 %vm289_vm0, %v280_v24 }
  0x3a   : > { %796 = vmatmul.msk.f32.gmra.mxu0 %vm289_vm0, %v281_v30  ;;  %804 = vmatmul.msk.f32.gmra.mxu1 %vm289_vm0, %v281_v30 }
  0x3b   : > { %812 = vmatmul.msk.f32.gmra.mxu2 %vm289_vm0, %v281_v30  ;;  %820 = vmatmul.msk.f32.gmra.mxu3 %vm289_vm0, %v281_v30 }
  0x42   : > { %797 = vmatmul.msk.f32.gmra.mxu0 %vm289_vm0, %v282_v33  ;;  %805 = vmatmul.msk.f32.gmra.mxu1 %vm289_vm0, %v282_v33 }
  0x43   : > { %813 = vmatmul.msk.f32.gmra.mxu2 %vm289_vm0, %v282_v33  ;;  %821 = vmatmul.msk.f32.gmra.mxu3 %vm289_vm0, %v282_v33 }
  0x4a   : > { %798 = vmatmul.msk.f32.gmra.mxu0 %vm289_vm0, %v283_v35  ;;  %806 = vmatmul.msk.f32.gmra.mxu1 %vm289_vm0, %v283_v35 }
  0x4b   : > { %814 = vmatmul.msk.f32.gmra.mxu2 %vm289_vm0, %v283_v35  ;;  %822 = vmatmul.msk.f32.gmra.mxu3 %vm289_vm0, %v283_v35 }
  0x52   : > { %799 = vmatmul.msk.f32.gmra.mxu0 %vm289_vm0, %v284_v36  ;;  %807 = vmatmul.msk.f32.gmra.mxu1 %vm289_vm0, %v284_v36 }
  0x53   : > { %815 = vmatmul.msk.f32.gmra.mxu2 %vm289_vm0, %v284_v36  ;;  %823 = vmatmul.msk.f32.gmra.mxu3 %vm289_vm0, %v284_v36 }
  0x7f   : > { %v569_v26 = vpop.permute.xlu2 %568 }
  0x87   : > { %v574_v39 = vpop.permute.xlu2 %573 }
  0x90   : > { %v549_v40 = vpop.permute.xlu0 %548 }
  0x91   : > { %v559_v0 = vpop.permute.xlu1 %558 }
  0x97   : > { %v331_v43 = vpop.f32.mrf.mxu0  ;;  %v372_v44 = vpop.f32.mrf.mxu1 }
  0x98   : > { %v490_v45 = vmul.f32 %v1166_v41, %v331_v43  ;;  %v491_v46 = vmul.f32 %v1168_v42, %v372_v44  ;;  %v554_v51 = vpop.permute.xlu0 %553 }
  0x99   : > { %v564_v13 = vpop.permute.xlu1 %563 }
  0x9a   : > { %v586_v47 = vmul.f32 %v549_v40, %v490_v45  ;;  %v587_v48 = vmul.f32 %v549_v40, %v491_v46 }
  0x9c   : > { %618 = vst [vmem:[%s1178_s29] sm:$0xff] %v586_v47 }
  0x9d   : > { %619 = vst [vmem:[%s1178_s29 + $0x8] sm:$0xff] %v587_v48 }
  0x9e   : > { %v413_v52 = vpop.f32.mrf.mxu2  ;;  %v454_v53 = vpop.f32.mrf.mxu3 }
  0x9f   : > { %v492_v54 = vmul.f32 %v1174_v49, %v413_v52  ;;  %v493_v55 = vmul.f32 %v1176_v50, %v454_v53  ;;  %v334_v56 = vpop.f32.mrf.mxu0  ;;  %v375_v57 = vpop.f32.mrf.mxu1 }
  0xa0   : > { %v494_v58 = vmul.f32 %v1166_v41, %v334_v56  ;;  %v495_v59 = vmul.f32 %v1168_v42, %v375_v57 }
  0xa1   : > { %v588_v60 = vmul.f32 %v549_v40, %v492_v54  ;;  %v589_v61 = vmul.f32 %v549_v40, %v493_v55 }
  0xa2   : > { %v590_v62 = vmul.f32 %v554_v51, %v494_v58  ;;  %v591_v63 = vmul.f32 %v554_v51, %v495_v59 }
  0xa3   : > { %620 = vst [vmem:[%s1178_s29 + $0x10] sm:$0xff] %v588_v60 }
  0xa4   : > { %621 = vst [vmem:[%s1178_s29 + $0x18] sm:$0xff] %v589_v61 }
  0xa5   : > { %622 = vst [vmem:[%s1178_s29 + $0x20] sm:$0xff] %v590_v62 }
  0xa6   : > { %v416_v1 = vpop.f32.mrf.mxu2  ;;  %v457_v2 = vpop.f32.mrf.mxu3  ;;  %623 = vst [vmem:[%s1178_s29 + $0x28] sm:$0xff] %v591_v63 }
  0xa7   : > { %v496_v3 = vmul.f32 %v1174_v49, %v416_v1  ;;  %v497_v4 = vmul.f32 %v1176_v50, %v457_v2  ;;  %v337_v5 = vpop.f32.mrf.mxu0  ;;  %v378_v6 = vpop.f32.mrf.mxu1 }
  0xa8   : > { %v498_v7 = vmul.f32 %v1166_v41, %v337_v5  ;;  %v499_v8 = vmul.f32 %v1168_v42, %v378_v6  ;;  %v579_v2 = vpop.permute.xlu0 %578 }
  0xa9   : > { %v592_v9 = vmul.f32 %v554_v51, %v496_v3  ;;  %v593_v10 = vmul.f32 %v554_v51, %v497_v4 }
  0xaa   : > { %v594_v11 = vmul.f32 %v559_v0, %v498_v7  ;;  %v595_v12 = vmul.f32 %v559_v0, %v499_v8 }
  0xab   : > { %624 = vst [vmem:[%s1178_s29 + $0x30] sm:$0xff] %v592_v9 }
  0xac   : > { %625 = vst [vmem:[%s1178_s29 + $0x38] sm:$0xff] %v593_v10 }
  0xad   : > { %626 = vst [vmem:[%s1178_s29 + $0x40] sm:$0xff] %v594_v11 }
  0xae   : > { %v419_v14 = vpop.f32.mrf.mxu2  ;;  %v460_v15 = vpop.f32.mrf.mxu3  ;;  %627 = vst [vmem:[%s1178_s29 + $0x48] sm:$0xff] %v595_v12 }
  0xaf   : > { %v500_v16 = vmul.f32 %v1174_v49, %v419_v14  ;;  %v501_v17 = vmul.f32 %v1176_v50, %v460_v15  ;;  %v340_v18 = vpop.f32.mrf.mxu0  ;;  %v381_v19 = vpop.f32.mrf.mxu1 }
  0xb0   : > { %v502_v20 = vmul.f32 %v1166_v41, %v340_v18  ;;  %v503_v21 = vmul.f32 %v1168_v42, %v381_v19 }
  0xb1   : > { %v596_v22 = vmul.f32 %v559_v0, %v500_v16  ;;  %v597_v23 = vmul.f32 %v559_v0, %v501_v17 }
  0xb2   : > { %v598_v24 = vmul.f32 %v564_v13, %v502_v20  ;;  %v599_v25 = vmul.f32 %v564_v13, %v503_v21 }
  0xb3   : > { %628 = vst [vmem:[%s1178_s29 + $0x50] sm:$0xff] %v596_v22 }
  0xb4   : > { %629 = vst [vmem:[%s1178_s29 + $0x58] sm:$0xff] %v597_v23 }
  0xb5   : > { %630 = vst [vmem:[%s1178_s29 + $0x60] sm:$0xff] %v598_v24 }
  0xb6   : > { %v422_v27 = vpop.f32.mrf.mxu2  ;;  %v463_v28 = vpop.f32.mrf.mxu3  ;;  %631 = vst [vmem:[%s1178_s29 + $0x68] sm:$0xff] %v599_v25 }
  0xb7   : > { %v504_v29 = vmul.f32 %v1174_v49, %v422_v27  ;;  %v505_v30 = vmul.f32 %v1176_v50, %v463_v28  ;;  %v343_v31 = vpop.f32.mrf.mxu0  ;;  %v384_v32 = vpop.f32.mrf.mxu1 }
  0xb8   : > { %v506_v33 = vmul.f32 %v1166_v41, %v343_v31  ;;  %v507_v34 = vmul.f32 %v1168_v42, %v384_v32 }
  0xb9   : > { %v600_v35 = vmul.f32 %v564_v13, %v504_v29  ;;  %v601_v36 = vmul.f32 %v564_v13, %v505_v30  ;;  %v584_v13 = vpop.permute.xlu1 %583 }
  0xba   : > { %v602_v37 = vmul.f32 %v569_v26, %v506_v33  ;;  %v603_v38 = vmul.f32 %v569_v26, %v507_v34 }
  0xbb   : > { %632 = vst [vmem:[%s1178_s29 + $0x70] sm:$0xff] %v600_v35 }
  0xbc   : > { %633 = vst [vmem:[%s1178_s29 + $0x78] sm:$0xff] %v601_v36 }
  0xbd   : > { %634 = vst [vmem:[%s1178_s29 + $0x80] sm:$0xff] %v602_v37 }
  0xbe   : > { %v425_v40 = vpop.f32.mrf.mxu2  ;;  %v466_v43 = vpop.f32.mrf.mxu3  ;;  %635 = vst [vmem:[%s1178_s29 + $0x88] sm:$0xff] %v603_v38 }
  0xbf   : > { %v508_v44 = vmul.f32 %v1174_v49, %v425_v40  ;;  %v509_v45 = vmul.f32 %v1176_v50, %v466_v43  ;;  %v346_v46 = vpop.f32.mrf.mxu0  ;;  %v387_v47 = vpop.f32.mrf.mxu1 }
  0xc0   : > { %v510_v48 = vmul.f32 %v1166_v41, %v346_v46  ;;  %v511_v51 = vmul.f32 %v1168_v42, %v387_v47 }
  0xc1   : > { %v604_v52 = vmul.f32 %v569_v26, %v508_v44  ;;  %v605_v53 = vmul.f32 %v569_v26, %v509_v45 }
  0xc2   : > { %v606_v54 = vmul.f32 %v574_v39, %v510_v48  ;;  %v607_v55 = vmul.f32 %v574_v39, %v511_v51 }
  0xc3   : > { %636 = vst [vmem:[%s1178_s29 + $0x90] sm:$0xff] %v604_v52 }
  0xc4   : > { %637 = vst [vmem:[%s1178_s29 + $0x98] sm:$0xff] %v605_v53 }
  0xc5   : > { %638 = vst [vmem:[%s1178_s29 + $0xa0] sm:$0xff] %v606_v54 }
  0xc6   : > { %v428_v56 = vpop.f32.mrf.mxu2  ;;  %v469_v57 = vpop.f32.mrf.mxu3  ;;  %639 = vst [vmem:[%s1178_s29 + $0xa8] sm:$0xff] %v607_v55 }
  0xc7   : > { %v512_v58 = vmul.f32 %v1174_v49, %v428_v56  ;;  %v513_v59 = vmul.f32 %v1176_v50, %v469_v57  ;;  %v349_v60 = vpop.f32.mrf.mxu0  ;;  %v390_v61 = vpop.f32.mrf.mxu1 }
  0xc8   : > { %v514_v62 = vmul.f32 %v1166_v41, %v349_v60  ;;  %v515_v63 = vmul.f32 %v1168_v42, %v390_v61 }
  0xc9   : > { %v608_v0 = vmul.f32 %v574_v39, %v512_v58  ;;  %v609_v1 = vmul.f32 %v574_v39, %v513_v59 }
  0xca   : > { %v610_v3 = vmul.f32 %v579_v2, %v514_v62  ;;  %v611_v4 = vmul.f32 %v579_v2, %v515_v63 }
  0xcb   : > { %640 = vst [vmem:[%s1178_s29 + $0xb0] sm:$0xff] %v608_v0 }
  0xcc   : > { %641 = vst [vmem:[%s1178_s29 + $0xb8] sm:$0xff] %v609_v1 }
  0xcd   : > { %642 = vst [vmem:[%s1178_s29 + $0xc0] sm:$0xff] %v610_v3 }
  0xce   : > { %643 = vst [vmem:[%s1178_s29 + $0xc8] sm:$0xff] %v611_v4  ;;  %v431_v5 = vpop.f32.mrf.mxu2  ;;  %v472_v6 = vpop.f32.mrf.mxu3 }
  0xcf   : > { %v516_v7 = vmul.f32 %v1174_v49, %v431_v5  ;;  %v517_v8 = vmul.f32 %v1176_v50, %v472_v6  ;;  %v352_v9 = vpop.f32.mrf.mxu0  ;;  %v393_v10 = vpop.f32.mrf.mxu1 }
  0xd0   : > { %v518_v11 = vmul.f32 %v1166_v41, %v352_v9  ;;  %v519_v12 = vmul.f32 %v1168_v42, %v393_v10 }
  0xd1   : > { %v612_v14 = vmul.f32 %v579_v2, %v516_v7  ;;  %v613_v15 = vmul.f32 %v579_v2, %v517_v8 }
  0xd2   : > { %v614_v16 = vmul.f32 %v584_v13, %v518_v11  ;;  %v615_v17 = vmul.f32 %v584_v13, %v519_v12 }
  0xd3   : > { %644 = vst [vmem:[%s1178_s29 + $0xd0] sm:$0xff] %v612_v14 }
  0xd4   : > { %645 = vst [vmem:[%s1178_s29 + $0xd8] sm:$0xff] %v613_v15 }
  0xd5   : > { %646 = vst [vmem:[%s1178_s29 + $0xe0] sm:$0xff] %v614_v16 }
  0xd6   : > { %647 = vst [vmem:[%s1178_s29 + $0xe8] sm:$0xff] %v615_v17  ;;  %v434_v41 = vpop.f32.mrf.mxu2  ;;  %v475_v42 = vpop.f32.mrf.mxu3 }
  0xd7   : > { %v520_v18 = vmul.f32 %v1174_v49, %v434_v41  ;;  %v521_v19 = vmul.f32 %v1176_v50, %v475_v42 }
  0xd9   : > { %v616_v20 = vmul.f32 %v584_v13, %v520_v18  ;;  %v617_v21 = vmul.f32 %v584_v13, %v521_v19 }
  0xdb   : > { %648 = vst [vmem:[%s1178_s29 + $0xf0] sm:$0xff] %v616_v20 }
  0xdc   : > { %649 = vst [vmem:[%s1178_s29 + $0xf8] sm:$0xff] %v617_v21 }
  0xdd   : > { %937 = shalt.err (!%p934_p5)
}
  0xde   : > { %s991_s13 = smov 512   ;;  %s992_s14 = smov 1024  }
  0xdf   : > { %s993_s29 = smov 32  }
  0xe0   : > { %830 = dma.vmem_to_hbm [thread:$0]  (%p1059_p4), %s667_s30, 4096, %s669_s18, %s651_s5, %s991_s13, %s992_s14, %s993_s29  }
  0xe1 PF: > { %p836_p6 = scmp.ge.s32.totalorder %s988_s20, 2  ;;  %s683_s21 = sand.u32 1, %s968_s15  }
  0xe2   : > { %s684_s22 = scalar_lea.sflag [#allocation3], %s683_s21 }
  0xe3   : > { %p833_p7 = pnand %p836_p6, %p1066_p8 }
  0xe5   : > { %p834_p9 = pneg %p833_p7 }
  0xe7   : > { %963 = dma.done.wait (%p834_p9), %s684_s22, 4096  }
  0xe8   : > { %965 = vsyncadd (%p834_p9), %s684_s22, 4294963200  ;;  %s17_s20 = sadd.s32 1, %s988_s20   ;;  %s1288_s15 = smov %s972_s16 }
  0xe9   : > { %p14_p10 = scmp.ge.s32.totalorder %s17_s20, 4   ;;  %s1289_s16 = smov %s976_s17 }
  0xea   : > { %s1290_s17 = smov %s1072_s28  ;;  %s1291_s18 = smov %s984_s19 }
  0xeb   : > { %s1292_s19 = smov %s1294_s23  ;;  %16 = sbr.rel (!%p14_p10) target bundleno = 4 (0x4), region = 80 }
  0xf0   :  { %690 = vsyncpa [#allocation3], 1 }
  0xf1   :  { %692 = vsyncpa [#allocation3 + $0x1], 1 }

</bundles_post_ra>
